<compile_context>
chip_gen: v7x
topology: tpu7x:2x2x1
jax: 0.10.0
libtpu: 0.0.40
codegen_flags: <defaults>
</compile_context>

<pallas_src>
import functools

import jax
import jax.numpy as jnp
from jax.experimental import pallas as pl
from jax.experimental.pallas import tpu as pltpu


def _pad8(n):
    return ((n + 7) // 8) * 8


# ---------------------------------------------------------------------------
# Fused Pallas kernel: 3-layer MLP from two packed weight slabs.
# ---------------------------------------------------------------------------

def fused_mlp_kernel(x_ref,       # VMEM (B, obs)                      f32
                     slab_ref,    # VMEM (rows_main, hid): W1|b1|W2|b2 f32
                     oslab_ref,   # VMEM (rows_out, act):  Wout|bout   f32
                     out_ref,     # VMEM (B, act)
                     *, obs, hid, off_b1, off_w2, off_b2, off_bo):
    # Unpack task weights with static, 8-row-aligned slices (zero-cost views).
    w1 = slab_ref[0:obs, :]                      # (obs, hid)
    b1 = slab_ref[off_b1:off_b1 + 1, :]          # (1, hid)
    w2 = slab_ref[off_w2:off_w2 + hid, :]        # (hid, hid)
    b2 = slab_ref[off_b2:off_b2 + 1, :]          # (1, hid)
    wo = oslab_ref[0:hid, :]                     # (hid, act)
    bo = oslab_ref[off_bo:off_bo + 1, :]         # (1, act)

    # fc1 + relu ; fc2 + relu ; fc_out (no relu) — f32 MXU accumulation.
    h = jnp.dot(x_ref[...], w1, preferred_element_type=jnp.float32)
    h = jnp.maximum(h + b1, 0.0)
    h = jnp.dot(h, w2, preferred_element_type=jnp.float32)
    h = jnp.maximum(h + b2, 0.0)
    out_ref[...] = jnp.dot(h, wo, preferred_element_type=jnp.float32) + bo


def munet_forward(x, slab_main, slab_out, *, obs, hid, act,
                  off_b1, off_w2, off_b2, off_bo):
    B = x.shape[0]
    vmem = pl.BlockSpec(memory_space=pltpu.MemorySpace.VMEM)
    kernel = functools.partial(
        fused_mlp_kernel, obs=obs, hid=hid,
        off_b1=off_b1, off_w2=off_w2, off_b2=off_b2, off_bo=off_bo)
    return pl.pallas_call(
        kernel,
        out_shape=jax.ShapeDtypeStruct((B, act), jnp.float32),
        in_specs=[vmem, vmem, vmem],
        out_specs=vmem,
    )(x, slab_main, slab_out)


# ---------------------------------------------------------------------------
# Parameter construction (deterministic, mirrors MLPMuNet.__init__ / set_task)
# ---------------------------------------------------------------------------

def basic_mlp_column(key, in_dim, hidden, out_dim):
    """Flattened params of BasicMLP in to_column() order:
    fc1.weight (hid,in), fc1.bias (hid), fc2.weight (out,hid), fc2.bias (out)."""
    k1, k2, k3, k4 = jax.random.split(key, 4)
    w1 = jax.random.normal(k1, (hidden, in_dim), jnp.float32) * 0.1
    b1 = jax.random.normal(k2, (hidden,), jnp.float32) * 0.1
    w2 = jax.random.normal(k3, (out_dim, hidden), jnp.float32) * 0.1
    b2 = jax.random.normal(k4, (out_dim,), jnp.float32) * 0.1
    return jnp.concatenate(
        [w1.reshape(-1), b1.reshape(-1), w2.reshape(-1), b2.reshape(-1)]
    )


def split_column(col, in_dim, hid, out_dim):
    """Unpack a flat BasicMLP column exactly as forward_from_column does."""
    i0, i1 = 0, in_dim * hid
    w1 = col[i0:i1].reshape(hid, in_dim)
    i0, i1 = i1, i1 + hid
    b1 = col[i0:i1]
    i0, i1 = i1, i1 + hid * out_dim
    w2 = col[i0:i1].reshape(out_dim, hid)
    i0, i1 = i1, i1 + out_dim
    b2 = col[i0:i1]
    assert i1 == col.shape[0], "did not use all parameters in column"
    return w1, b1, w2, b2


class MLPMuNetPallas:
    def __init__(self, obs_dims, act_dim, hidden_size, dict_dim, key):
        self.obs_dims = obs_dims
        self.act_dim = act_dim
        self.hidden_size = hidden_size
        self.dict_dim = dict_dim

        keys = jax.random.split(key, dict_dim + 1)
        cols = [
            basic_mlp_column(keys[k], obs_dims, hidden_size, hidden_size)
            for k in range(dict_dim)
        ]
        # Faithful to_column() dictionary layout (used by the reference path).
        self.L = jnp.stack(cols, axis=1)                       # (P, dict_dim)
        P = self.L.shape[0]

        # set_task(0) with T=0 < dict_dim: one-hot S, zero epsilon column.
        self.S = jnp.zeros((dict_dim, 1), jnp.float32).at[0, 0].set(1.0)
        self.epsilon_col = jnp.zeros((P, 1), jnp.float32)

        # fc_out for the task: Linear(hidden, act) with params * 0.01.
        ko_w, ko_b = jax.random.split(keys[dict_dim], 2)
        self.fc_out_w = jax.random.normal(
            ko_w, (act_dim, hidden_size), jnp.float32) * 0.01
        self.fc_out_b = jax.random.normal(ko_b, (act_dim,), jnp.float32) * 0.01

        self._prepare_task_weights()

        # jit-wrapped fused forward (static offsets baked via partial/closure).
        self._fwd = jax.jit(functools.partial(
            munet_forward, obs=obs_dims, hid=hidden_size, act=act_dim,
            off_b1=self.off_b1, off_w2=self.off_w2,
            off_b2=self.off_b2, off_bo=self.off_bo))

    # --- set_task-time composition: theta is static per task, so compose and
    # --- pack the composed weights ONCE, not on every forward.
    def _prepare_task_weights(self):
        obs, hid, act = self.obs_dims, self.hidden_size, self.act_dim

        # Exact reference composition (same op order as torch.mm(L,S)+eps).
        theta = (self.L @ self.S + self.epsilon_col).reshape(-1)
        w1, b1, w2, b2 = split_column(theta, obs, hid, hid)

        # Packed slab 1: [ W1.T | b1 | W2.T | b2 ], each segment 8-row aligned,
        # lane axis = hid (kernel unpacks with aligned static slices).
        self.off_b1 = _pad8(obs)
        self.off_w2 = self.off_b1 + 8
        self.off_b2 = self.off_w2 + _pad8(hid)
        rows_main = self.off_b2 + 8
        slab = jnp.zeros((rows_main, hid), jnp.float32)
        slab = slab.at[0:obs, :].set(w1.T)
        slab = slab.at[self.off_b1, :].set(b1)
        slab = slab.at[self.off_w2:self.off_w2 + hid, :].set(w2.T)
        slab = slab.at[self.off_b2, :].set(b2)
        self.slab_main = slab

        # Packed slab 2: [ Wout.T | bout ], lane axis = act.
        self.off_bo = _pad8(hid)
        rows_out = self.off_bo + 8
        oslab = jnp.zeros((rows_out, act), jnp.float32)
        oslab = oslab.at[0:hid, :].set(self.fc_out_w.T)
        oslab = oslab.at[self.off_bo, :].set(self.fc_out_b)
        self.slab_out = oslab

    def forward(self, x):
        # Hot path: one fused, jitted Pallas kernel; 3 input DMAs total.
        return self._fwd(x, self.slab_main, self.slab_out)

    def forward_reference(self, x):
        # Literal translation of MLPMuNet.forward / forward_from_column.
        theta = (self.L @ self.S + self.epsilon_col).reshape(-1)
        obs, hid = self.obs_dims, self.hidden_size
        w1, b1, w2, b2 = split_column(theta, obs, hid, hid)
        h = jnp.maximum(x @ w1.T + b1, 0.0)
        h = jnp.maximum(h @ w2.T + b2, 0.0)
        return h @ self.fc_out_w.T + self.fc_out_b


# ---------------------------------------------------------------------------
# Main
# ---------------------------------------------------------------------------

if __name__ == "__main__":
    obs_dims, act_dim, hidden_size, dict_dim = 16, 8, 32, 4
    batch = 2

    key = jax.random.PRNGKey(0)
    k_model, k_x = jax.random.split(key)

    model = MLPMuNetPallas(obs_dims, act_dim, hidden_size, dict_dim, k_model)
    x = jax.random.normal(k_x, (batch, obs_dims), jnp.float32)

    out = jax.block_until_ready(model.forward(x))
    ref = jax.block_until_ready(model.forward_reference(x))

    assert out.shape == (batch, act_dim)
    assert jnp.allclose(out, ref, atol=1e-5, rtol=1e-5), (out, ref)

    print("KERNEL_OK")
</pallas_src>

<mosaic_0001>
module attributes {stable_mosaic.version = 11 : i64} {
  func.func @fused_mlp_kernel(%arg0: memref<2x16xf32, #tpu.memory_space<vmem>>, %arg1: memref<64x32xf32, #tpu.memory_space<vmem>>, %arg2: memref<40x8xf32, #tpu.memory_space<vmem>>, %arg3: memref<2x8xf32, #tpu.memory_space<vmem>>) attributes {dimension_semantics = [], scalar_prefetch = 0 : i64, scratch_operands = 0 : i64, tpu.core_type = #tpu.core_type<tc>} {
    %c0 = arith.constant 0 : index
    %c0_0 = arith.constant 0 : index
    %0 = vector.load %arg1[%c0, %c0_0] : memref<64x32xf32, #tpu.memory_space<vmem>>, vector<16x32xf32>
    %c16 = arith.constant 16 : index
    %c0_1 = arith.constant 0 : index
    %1 = vector.load %arg1[%c16, %c0_1] : memref<64x32xf32, #tpu.memory_space<vmem>>, vector<1x32xf32>
    %c24 = arith.constant 24 : index
    %c0_2 = arith.constant 0 : index
    %2 = vector.load %arg1[%c24, %c0_2] : memref<64x32xf32, #tpu.memory_space<vmem>>, vector<32x32xf32>
    %c56 = arith.constant 56 : index
    %c0_3 = arith.constant 0 : index
    %3 = vector.load %arg1[%c56, %c0_3] : memref<64x32xf32, #tpu.memory_space<vmem>>, vector<1x32xf32>
    %c0_4 = arith.constant 0 : index
    %c0_5 = arith.constant 0 : index
    %4 = vector.load %arg2[%c0_4, %c0_5] : memref<40x8xf32, #tpu.memory_space<vmem>>, vector<32x8xf32>
    %c32 = arith.constant 32 : index
    %c0_6 = arith.constant 0 : index
    %5 = vector.load %arg2[%c32, %c0_6] : memref<40x8xf32, #tpu.memory_space<vmem>>, vector<1x8xf32>
    %c0_7 = arith.constant 0 : index
    %c0_8 = arith.constant 0 : index
    %6 = vector.load %arg0[%c0_7, %c0_8] : memref<2x16xf32, #tpu.memory_space<vmem>>, vector<2x16xf32>
    %cst = arith.constant dense<0.000000e+00> : vector<2x32xf32>
    %7 = tpu.matmul %6, %0, %cst {dimension_numbers = #tpu.dot_dimension_numbers<[1], [0], [0], [1], [0, 0, 1, 1], [], []>} : vector<2x16xf32>, vector<16x32xf32>, vector<2x32xf32> -> vector<2x32xf32>
    %8 = vector.broadcast %1 : vector<1x32xf32> to vector<2x32xf32>
    %9 = arith.addf %7, %8 : vector<2x32xf32>
    %cst_9 = arith.constant 0.000000e+00 : f32
    %10 = vector.broadcast %cst_9 : f32 to vector<2x32xf32>
    %11 = arith.maximumf %9, %10 : vector<2x32xf32>
    %cst_10 = arith.constant dense<0.000000e+00> : vector<2x32xf32>
    %12 = tpu.matmul %11, %2, %cst_10 {dimension_numbers = #tpu.dot_dimension_numbers<[1], [0], [0], [1], [0, 0, 1, 1], [], []>} : vector<2x32xf32>, vector<32x32xf32>, vector<2x32xf32> -> vector<2x32xf32>
    %13 = vector.broadcast %3 : vector<1x32xf32> to vector<2x32xf32>
    %14 = arith.addf %12, %13 : vector<2x32xf32>
    %cst_11 = arith.constant 0.000000e+00 : f32
    %15 = vector.broadcast %cst_11 : f32 to vector<2x32xf32>
    %16 = arith.maximumf %14, %15 : vector<2x32xf32>
    %cst_12 = arith.constant dense<0.000000e+00> : vector<2x8xf32>
    %17 = tpu.matmul %16, %4, %cst_12 {dimension_numbers = #tpu.dot_dimension_numbers<[1], [0], [0], [1], [0, 0, 1, 1], [], []>} : vector<2x32xf32>, vector<32x8xf32>, vector<2x8xf32> -> vector<2x8xf32>
    %18 = vector.broadcast %5 : vector<1x8xf32> to vector<2x8xf32>
    %19 = arith.addf %17, %18 : vector<2x8xf32>
    %c0_13 = arith.constant 0 : index
    %c0_14 = arith.constant 0 : index
    %20 = vector.load %arg3[%c0_13, %c0_14] : memref<2x8xf32, #tpu.memory_space<vmem>>, vector<2x8xf32>
    tpu.vector_store %arg3[%c0_13, %c0_14], %19 {strides = array<i32>} : memref<2x8xf32, #tpu.memory_space<vmem>>, vector<2x8xf32>,
    return
  }
}

</mosaic_0001>

<bundles_post_ra>
// kernel: munet_forward.1
= control target key start
LH: loop header
LB: loop body
LE: loop exit
PB: predicated region body
PF: predicated region fallthrough
CT: control target
= control target key end

     0   :  { %v371_v2 = vmov 0.0|0.0   ;;  %vm372_vm0 = vmmov 0   ;;  %v373_v4 = vmov 0.0   ;;  %s452_s0 = inlined_call_operand.vmem [shape: f32[2,16], index: 0, kind: input, shape index: {}]   ;;  %s453_s1 = inlined_call_operand.vmem [shape: f32[64,32], index: 1, kind: input, shape index: {}]   ;;  %s454_s2 = inlined_call_operand.vmem [shape: f32[40,8], index: 2, kind: input, shape index: {}]   ;;  %s455_s3 = inlined_call_operand.hbm [shape: f32[2,8], index: 3, kind: output, shape index: {}]  }
   0x1   :  { %v15_v0 = vld [vmem:[%s453_s1] sm:$0xff]  ;;  %v16_v1 = vld [vmem:[%s453_s1 + $0x8] sm:$0xff]  ;;  %328 = vmatprep.subr.bf16.mxu0 %v371_v2  ;;  %303 = vmatprep.mubr.msk.f32.mxu0 %vm372_vm0, %v373_v4  ;;  %v18_v5 = vld [vmem:[%s453_s1 + $0x18] sm:$0xff] }
   0x2   :  { %v329_v3 = vpack.c.bf16 %v16_v1, %v15_v0  ;;  %v19_v6 = vld [vmem:[%s453_s1 + $0x20] sm:$0xff]  ;;  %331 = vmatprep.subr.bf16.mxu1 %v371_v2  ;;  %314 = vmatprep.mubr.msk.f32.mxu1 %vm372_vm0, %v373_v4 }
   0x3   :  { %v332_v7 = vpack.c.bf16 %v19_v6, %v18_v5 }
   0x4   :  { %8 = vsyncpa [#allocation3], 0  ;;  %330 = vmatpush3.bf16.msra.mxu0 %v329_v3  ;;  %v28_v8 = vld [vmem:[%s452_s0] sm:$0x3]  ;;  %vm33_vm1 = vcmask 130048   ;;  %v20_v9 = vld [vmem:[%s453_s1 + $0x28] sm:$0xff] }
   0x5   :  { %333 = vmatpush3.bf16.msra.mxu1 %v332_v7  ;;  %337 = vmatprep.subr.bf16.mxu0 %v371_v2  ;;  %v21_v10 = vld [vmem:[%s453_s1 + $0x30] sm:$0xff]  ;;  %v23_v12 = vld [vmem:[%s454_s2] sm:$0xff]  ;;  %v24_v13 = vld [vmem:[%s454_s2 + $0x8] sm:$0xff]  ;;  %vm112_vm2 = vcmask 261120   ;;  %s374_s12 = smov [#allocation2]   ;;  %vm264_vm3 = vcmask 58368  }
   0x6   :  { %334 = vmatprep.subr.bf16.mxu1 %v371_v2  ;;  %v335_v11 = vpack.c.bf16 %v21_v10, %v20_v9  ;;  %v338_v14 = vpack.c.bf16 %v24_v13, %v23_v12  ;;  %v280_v15 = vld [vmem:[%s453_s1 + $0x10] ss:$0 sm:$0xff]  ;;  %v26_v21 = vld [vmem:[%s454_s2 + $0x18] sm:$0xff]  ;;  %v284_v28 = vld [vmem:[%s454_s2 + $0x20] ss:$0 sm:$0xff]  ;;  %s272_s13 = sshll.u32 %s374_s12, 4  ;;  %s273_s13 = int_to_ptr.vmem [resolvable:$true] %s272_s13 }
   0x7   :  { %304 = vmatmul.mubr.msk.f32.vlgmr.msra.gmra.mrb[0].mxu0 %vm33_vm1, %v28_v8  ;;  %v25_v20 = vld [vmem:[%s454_s2 + $0x10] sm:$0xff]  ;;  %v282_v23 = vld [vmem:[%s453_s1 + $0x38] ss:$0 sm:$0xff]  ;;  %s347_s14 = scalar_lea.vmem %s273_s13, 32  ;;  %p352_p1 = scmp.lt.s32.totalorder %s273_s13, %s273_s13 }
   0x8   :  { %325 = vmatprep.mubr.msk.f32.mxu0 %vm372_vm0, %v373_v4  ;;  %339 = vmatpush3.bf16.msra.mxu0 %v338_v14  ;;  %v341_v22 = vpack.c.bf16 %v26_v21, %v25_v20  ;;  %p348_p0 = scmp.ne.s32.totalorder %s273_s13, %s347_s14  ;;  %p353_p2 = scmp.lt.s32.totalorder %s347_s14, %s347_s14 }
   0x9   :  { %336 = vmatpush3.bf16.msra.mxu1 %v335_v11  ;;  %340 = vmatprep.subr.bf16.mxu0 %v371_v2 }
   0xa   :  { %p354_p3 = por %p353_p2, %p352_p1 }
   0xc   :  { %342 = vmatpush3.bf16.msra.mxu0 %v341_v22  ;;  %p355_p4 = pnand %p354_p3, %p348_p0 }
  0xda   :  { %v103_v16 = vpop.f32.mrb[0].mxu0 }
  0xdb   :  { %v104_v17 = vadd.f32 %v280_v15, %v103_v16  ;;  %v305_v18 = vpop.f32.mrb[1].mxu0 }
  0xdd   :  { %v107_v19 = vmax.f32 %v104_v17, 0.0 }
  0xdf   :  { %315 = vmatmul.mubr.msk.f32.vlgmr.msra.gmra.mrb[0].mxu1 %vm112_vm2, %v107_v19 }
 0x1b2   :  { %v182_v24 = vpop.f32.mrb[0].mxu1 }
 0x1b3   :  { %v183_v25 = vadd.f32 %v282_v23, %v182_v24  ;;  %v316_v26 = vpop.f32.mrb[1].mxu1 }
 0x1b5   :  { %v186_v27 = vmax.f32 %v183_v25, 0.0 }
 0x1b7   :  { %326 = vmatmul.mubr.msk.f32.vlgmr.msra.gmra.mrb[2].mxu0 %vm112_vm2, %v186_v27 }
 0x28a   :  { %v260_v29 = vpop.f32.mrb[2].mxu0 }
 0x28b   :  { %v261_v30 = vadd.f32 %v284_v28, %v260_v29  ;;  %v327_v31 = vpop.f32.mrb[3].mxu0 }
 0x28d   :  { %265 = vst.msk [vmem:[#allocation2] sm:$0x3] %vm264_vm3, %v261_v30 }
 0x28e   :  { %358 = shalt.err (!%p355_p4)
}
 0x28f   :  { %s359_s16 = scalar_lea.hbm %s455_s3, 32 }
 0x290   :  { %p360_p5 = scmp.ne.s32.totalorder %s455_s3, %s359_s16  ;;  %p363_p6 = scmp.lt.u32.totalorder %s359_s16, %s455_s3 }
 0x292   :  { %p365_p7 = pnand %p363_p6, %p360_p5 }
 0x294   :  { %368 = shalt.err (!%p365_p7)
}
 0x295   :  { %275 = dma.vmem_to_hbm [thread:$0]  %s273_s13, 32, %s455_s3, [#allocation3]  }
 0x296   :  { %369 = dma.done.wait [#allocation3], 32  }
 0x297   :  { %370 = vsyncadd [#allocation3], 4294967264 }
 0x298   :  { %279 = vsyncpa [#allocation3], 1 }

</bundles_post_ra>
